<compile_context>
chip_gen: v7x
topology: tpu7x:2x2x1
jax: 0.10.0
libtpu: 0.0.40
codegen_flags: <defaults>
</compile_context>

<pallas_src>
import math
import functools

import jax
import jax.numpy as jnp
from jax.experimental import pallas as pl
from jax.experimental.pallas import tpu as pltpu

# ------------------------- small demo configuration --------------------------
B = 2            # batch
SEQ = 64         # tokens that get flattened at the end
EMBED_DIM = 32   # opt.feature_size  (module default is larger; shrunk for demo)
DIM_FF = 64      # opt.Dim_FdFwd
EPS = 1e-5       # nn.LayerNorm default


# ------------------------------- Pallas kernels -------------------------------
def _make_kernel(pack, eps):
    """Fused LayerNorm -> Linear1 -> ReLU -> Linear2 -> residual, on a packed
    (rows, pack*E) lane-dense slab."""
    if pack > 1:
        def kernel(x_ref, avg_ref, g_ref, beta_ref, w1_ref, b1_ref,
                   w2_ref, b2_ref, o_ref):
            xp = x_ref[...]                                   # (TR, P*E) f32
            avg = avg_ref[...]                                # (P*E, P*E) group-mean
            mu = jnp.dot(xp, avg, preferred_element_type=jnp.float32)
            xc = xp - mu
            var = jnp.dot(xc * xc, avg, preferred_element_type=jnp.float32)
            src = xc * jax.lax.rsqrt(var + eps) * g_ref[...] + beta_ref[...]

            h = jnp.dot(src.astype(jnp.bfloat16), w1_ref[...],
                        preferred_element_type=jnp.float32) + b1_ref[...]
            h = jnp.maximum(h, 0.0)
            src2 = jnp.dot(h.astype(jnp.bfloat16), w2_ref[...],
                           preferred_element_type=jnp.float32) + b2_ref[...]
            o_ref[...] = src + src2
        return kernel

    def kernel(x_ref, g_ref, beta_ref, w1_ref, b1_ref, w2_ref, b2_ref, o_ref):
        x = x_ref[...]                                        # (TR, E) f32
        mu = jnp.mean(x, axis=-1, keepdims=True)
        xc = x - mu
        var = jnp.mean(xc * xc, axis=-1, keepdims=True)
        src = xc * jax.lax.rsqrt(var + eps) * g_ref[...] + beta_ref[...]

        h = jnp.dot(src.astype(jnp.bfloat16), w1_ref[...],
                    preferred_element_type=jnp.float32) + b1_ref[...]
        h = jnp.maximum(h, 0.0)
        src2 = jnp.dot(h.astype(jnp.bfloat16), w2_ref[...],
                       preferred_element_type=jnp.float32) + b2_ref[...]
        o_ref[...] = src + src2
    return kernel


# ------------------------------ sizing helpers ---------------------------------
def _vmem_capacity_bytes():
    """Physical VMEM of the attached chip; conservative v7x fallback."""
    try:
        info = pltpu.get_tpu_info()
        cap = getattr(info, "vmem_capacity_bytes", None)
        if cap:
            return int(cap)
    except Exception:
        pass
    return 64 << 20


def _pick_tile_rows(r, pe, resident_bytes, budget_bytes):
    """Row tile for the packed (r, pe) array.

    Counts f32 in+out row tiles (double-buffered) plus the resident
    (double-buffered) parameter blocks against `budget_bytes`; keeps the tile
    sublane-aligned, caps it at ~1024 rows (HBM-roofline sweet spot) and
    guarantees >= 2 grid steps when there is enough work (v7x megacore)."""
    per_row = 2 * 2 * pe * 4                       # (in + out) x 2 buffers x f32
    avail = max(budget_bytes - 2 * resident_bytes, per_row * 8)
    tr = int(avail // per_row)
    tr = max(8, min(tr, 1024, r))
    if r >= 16:
        tr = min(tr, -(-r // 2))                   # >= 2 steps -> both v7x TCs busy
    tr = max(8, (tr // 8) * 8)                     # sublane-aligned
    tr = min(tr, r)
    t = tr                                         # prefer an even division of r
    while t > 8 and r % t:
        t -= 8
    return t if (t >= 8 and r % t == 0) else tr


def _block_diag(w, pack):
    """(K,N) -> (pack*K, pack*N) with `w` repeated on the diagonal blocks."""
    if pack == 1:
        return w
    k, n = w.shape
    out = jnp.zeros((pack * k, pack * n), w.dtype)
    for g in range(pack):
        out = out.at[g * k:(g + 1) * k, g * n:(g + 1) * n].set(w)
    return out


def _group_avg_matrix(e, pack):
    """(PE,PE) with 1/E in each ExE diagonal block: xp @ M -> per-group means."""
    return jnp.kron(jnp.eye(pack, dtype=jnp.float32),
                    jnp.full((e, e), 1.0 / e, jnp.float32))


# ------------------------------- builder / wrapper ------------------------------
def make_fdfwd(params, *, eps=EPS):
    """One-time prep (pack factor, bf16 cast, block-diag expansion, tiled
    LN/bias vectors), returns a jitted forward(x) matching FdFwd.forward."""
    e = params['ln_g'].shape[0]
    f = params['w1'].shape[1]

    # Pack factor so the slab lane dim is a multiple of 128; fall back to plain
    # rows if the block-diagonal expansion would get too large (weird dims).
    pack = 128 // math.gcd(e, 128)
    if pack > 1 and (pack * e) * (pack * f) * 2 > (8 << 20):
        pack = 1
    pe, pf = pack * e, pack * f

    consts = []
    if pack > 1:
        consts.append(_group_avg_matrix(e, pack))                          # avg
    consts += [
        jnp.tile(params['ln_g'], pack).reshape(1, pe).astype(jnp.float32),  # gamma
        jnp.tile(params['ln_b'], pack).reshape(1, pe).astype(jnp.float32),  # beta
        _block_diag(params['w1'].astype(jnp.bfloat16), pack),               # (PE,PF)
        jnp.tile(params['b1'], pack).reshape(1, pf).astype(jnp.float32),    # b1
        _block_diag(params['w2'].astype(jnp.bfloat16), pack),               # (PF,PE)
        jnp.tile(params['b2'], pack).reshape(1, pe).astype(jnp.float32),    # b2
    ]
    const_bytes = sum(int(c.size) * c.dtype.itemsize for c in consts)

    kernel = _make_kernel(pack, eps)
    cap = _vmem_capacity_bytes()
    budget = int(cap * 0.5)

    @jax.jit
    def forward(x):
        b = x.shape[0]
        x2d = x.reshape(-1, e)                         # (B*SEQ, E), free reshape
        m = x2d.shape[0]
        m_pad = -(-m // pack) * pack
        if m_pad != m:                                 # rare: make rows packable
            x2d = jnp.pad(x2d, ((0, m_pad - m), (0, 0)))
        r = m_pad // pack
        xp = x2d.reshape(r, pe)                        # lane-dense packed slab

        tr = _pick_tile_rows(r, pe, const_bytes, budget)
        grid = (pl.cdiv(r, tr),)

        row_spec = pl.BlockSpec((tr, pe), lambda i: (i, 0))
        # Constant parameter blocks, resident across all grid steps.
        # (NOTE: would use pipeline_mode=pl.Buffered(1) to single-buffer them;
        # instead they are counted double-buffered in the VMEM budget above.)
        const_specs = [pl.BlockSpec(c.shape, lambda i: (0, 0)) for c in consts]

        need = 2 * (2 * tr * pe * 4) + 2 * const_bytes
        vmem_limit = int(min(max(2 * need, 32 << 20), int(cap * 0.8)))

        out = pl.pallas_call(
            kernel,
            out_shape=jax.ShapeDtypeStruct((r, pe), jnp.float32),
            grid=grid,
            in_specs=[row_spec] + const_specs,
            out_specs=row_spec,
            compiler_params=pltpu.CompilerParams(
                dimension_semantics=("parallel",),
                vmem_limit_bytes=vmem_limit),
        )(xp, *consts)

        out_flat = out.reshape(-1)
        if m_pad != m:
            out_flat = out_flat[: m * e]
        return out_flat.reshape(b, -1)                 # == src.view(B, -1)

    return forward


# --------------------------- pure-JAX reference --------------------------------
def fdfwd_reference(x, p):
    mu = jnp.mean(x, axis=-1, keepdims=True)
    var = jnp.mean((x - mu) ** 2, axis=-1, keepdims=True)
    src = (x - mu) * jax.lax.rsqrt(var + EPS) * p['ln_g'] + p['ln_b']
    h = jnp.maximum(src @ p['w1'] + p['b1'], 0.0)
    src2 = h @ p['w2'] + p['b2']
    out = src + src2
    return out.reshape(x.shape[0], -1)


# ---------------------------- deterministic params -----------------------------
def init_params(key):
    ks = jax.random.split(key, 4)
    nrm = lambda k, shp, std=0.05: std * jax.random.normal(k, shp, jnp.float32)
    return {
        # LayerNorm keeps PyTorch defaults (weight=1, bias=0); _create_weights
        # only re-initialises Conv1d/Linear/BatchNorm1d *weights* (std=0.05).
        'ln_g': jnp.ones((EMBED_DIM,), jnp.float32),
        'ln_b': jnp.zeros((EMBED_DIM,), jnp.float32),
        'w1': nrm(ks[0], (EMBED_DIM, DIM_FF)),      # Linear1 weight (pre-transposed)
        'b1': nrm(ks[1], (DIM_FF,), 0.01),
        'w2': nrm(ks[2], (DIM_FF, EMBED_DIM)),      # Linear2 weight (pre-transposed)
        'b2': nrm(ks[3], (EMBED_DIM,), 0.01),
    }


if __name__ == "__main__":
    key = jax.random.PRNGKey(0)
    kx, kp = jax.random.split(key)
    x = jax.random.normal(kx, (B, SEQ, EMBED_DIM), dtype=jnp.float32)
    params = init_params(kp)

    fwd = make_fdfwd(params)
    out = jax.block_until_ready(fwd(x))

    assert out.shape == (B, SEQ * EMBED_DIM), out.shape
    assert bool(jnp.all(jnp.isfinite(out)))

    # Correctness vs an f32 reference (loose tolerance: matmul operands are
    # bf16 on the MXU inside the kernel).
    ref = fdfwd_reference(x, params)
    err = float(jnp.max(jnp.abs(out - ref)))
    assert bool(jnp.allclose(out, ref, rtol=3e-2, atol=3e-2)), err

    print("KERNEL_OK")
</pallas_src>

<mosaic_0001>
module attributes {stable_mosaic.version = 11 : i64} {
  func.func @kernel(%arg0: i32, %arg1: memref<16x128xf32, #tpu.memory_space<vmem>>, %arg2: memref<128x128xf32, #tpu.memory_space<vmem>>, %arg3: memref<1x128xf32, #tpu.memory_space<vmem>>, %arg4: memref<1x128xf32, #tpu.memory_space<vmem>>, %arg5: memref<128x256xbf16, #tpu.memory_space<vmem>>, %arg6: memref<1x256xf32, #tpu.memory_space<vmem>>, %arg7: memref<256x128xbf16, #tpu.memory_space<vmem>>, %arg8: memref<1x128xf32, #tpu.memory_space<vmem>>, %arg9: memref<16x128xf32, #tpu.memory_space<vmem>>) attributes {dimension_semantics = [#tpu.dimension_semantics<parallel>], iteration_bounds = array<i64: 2>, scalar_prefetch = 0 : i64, scratch_operands = 0 : i64, tpu.core_type = #tpu.core_type<tc>, window_params = [{transform_indices = @transform_0, window_bounds = array<i64: 16, 128>}, {pipeline_mode = #tpu.pipeline_mode<synchronous>, transform_indices = @transform_1, window_bounds = array<i64: 128, 128>}, {pipeline_mode = #tpu.pipeline_mode<synchronous>, transform_indices = @transform_2, window_bounds = array<i64: 1, 128>}, {pipeline_mode = #tpu.pipeline_mode<synchronous>, transform_indices = @transform_3, window_bounds = array<i64: 1, 128>}, {pipeline_mode = #tpu.pipeline_mode<synchronous>, transform_indices = @transform_4, window_bounds = array<i64: 128, 256>}, {pipeline_mode = #tpu.pipeline_mode<synchronous>, transform_indices = @transform_5, window_bounds = array<i64: 1, 256>}, {pipeline_mode = #tpu.pipeline_mode<synchronous>, transform_indices = @transform_6, window_bounds = array<i64: 256, 128>}, {pipeline_mode = #tpu.pipeline_mode<synchronous>, transform_indices = @transform_7, window_bounds = array<i64: 1, 128>}, {transform_indices = @transform_8, window_bounds = array<i64: 16, 128>}]} {
    %c0 = arith.constant 0 : index
    %c0_0 = arith.constant 0 : index
    %0 = vector.load %arg1[%c0, %c0_0] : memref<16x128xf32, #tpu.memory_space<vmem>>, vector<16x128xf32>
    %c0_1 = arith.constant 0 : index
    %c0_2 = arith.constant 0 : index
    %1 = vector.load %arg2[%c0_1, %c0_2] : memref<128x128xf32, #tpu.memory_space<vmem>>, vector<128x128xf32>
    %cst = arith.constant dense<0.000000e+00> : vector<16x128xf32>
    %2 = tpu.matmul %0, %1, %cst {dimension_numbers = #tpu.dot_dimension_numbers<[1], [0], [0], [1], [0, 0, 1, 1], [], []>} : vector<16x128xf32>, vector<128x128xf32>, vector<16x128xf32> -> vector<16x128xf32>
    %3 = arith.subf %0, %2 : vector<16x128xf32>
    %4 = arith.mulf %3, %3 : vector<16x128xf32>
    %cst_3 = arith.constant dense<0.000000e+00> : vector<16x128xf32>
    %5 = tpu.matmul %4, %1, %cst_3 {dimension_numbers = #tpu.dot_dimension_numbers<[1], [0], [0], [1], [0, 0, 1, 1], [], []>} : vector<16x128xf32>, vector<128x128xf32>, vector<16x128xf32> -> vector<16x128xf32>
    %cst_4 = arith.constant 9.99999974E-6 : f32
    %6 = vector.broadcast %cst_4 : f32 to vector<16x128xf32>
    %7 = arith.addf %5, %6 : vector<16x128xf32>
    %8 = math.rsqrt %7 : vector<16x128xf32>
    %9 = arith.mulf %3, %8 : vector<16x128xf32>
    %c0_5 = arith.constant 0 : index
    %c0_6 = arith.constant 0 : index
    %10 = vector.load %arg3[%c0_5, %c0_6] : memref<1x128xf32, #tpu.memory_space<vmem>>, vector<1x128xf32>
    %11 = vector.broadcast %10 : vector<1x128xf32> to vector<16x128xf32>
    %12 = arith.mulf %9, %11 : vector<16x128xf32>
    %c0_7 = arith.constant 0 : index
    %c0_8 = arith.constant 0 : index
    %13 = vector.load %arg4[%c0_7, %c0_8] : memref<1x128xf32, #tpu.memory_space<vmem>>, vector<1x128xf32>
    %14 = vector.broadcast %13 : vector<1x128xf32> to vector<16x128xf32>
    %15 = arith.addf %12, %14 : vector<16x128xf32>
    %16 = arith.truncf %15 : vector<16x128xf32> to vector<16x128xbf16>
    %c0_9 = arith.constant 0 : index
    %c0_10 = arith.constant 0 : index
    %17 = vector.load %arg5[%c0_9, %c0_10] : memref<128x256xbf16, #tpu.memory_space<vmem>>, vector<128x256xbf16>
    %cst_11 = arith.constant dense<0.000000e+00> : vector<16x256xf32>
    %18 = tpu.matmul %16, %17, %cst_11 {dimension_numbers = #tpu.dot_dimension_numbers<[1], [0], [0], [1], [0, 0, 1, 1], [], []>} : vector<16x128xbf16>, vector<128x256xbf16>, vector<16x256xf32> -> vector<16x256xf32>
    %c0_12 = arith.constant 0 : index
    %c0_13 = arith.constant 0 : index
    %19 = vector.load %arg6[%c0_12, %c0_13] : memref<1x256xf32, #tpu.memory_space<vmem>>, vector<1x256xf32>
    %20 = vector.broadcast %19 : vector<1x256xf32> to vector<16x256xf32>
    %21 = arith.addf %18, %20 : vector<16x256xf32>
    %cst_14 = arith.constant 0.000000e+00 : f32
    %22 = vector.broadcast %cst_14 : f32 to vector<16x256xf32>
    %23 = arith.maximumf %21, %22 : vector<16x256xf32>
    %24 = arith.truncf %23 : vector<16x256xf32> to vector<16x256xbf16>
    %c0_15 = arith.constant 0 : index
    %c0_16 = arith.constant 0 : index
    %25 = vector.load %arg7[%c0_15, %c0_16] : memref<256x128xbf16, #tpu.memory_space<vmem>>, vector<256x128xbf16>
    %cst_17 = arith.constant dense<0.000000e+00> : vector<16x128xf32>
    %26 = tpu.matmul %24, %25, %cst_17 {dimension_numbers = #tpu.dot_dimension_numbers<[1], [0], [0], [1], [0, 0, 1, 1], [], []>} : vector<16x256xbf16>, vector<256x128xbf16>, vector<16x128xf32> -> vector<16x128xf32>
    %c0_18 = arith.constant 0 : index
    %c0_19 = arith.constant 0 : index
    %27 = vector.load %arg8[%c0_18, %c0_19] : memref<1x128xf32, #tpu.memory_space<vmem>>, vector<1x128xf32>
    %28 = vector.broadcast %27 : vector<1x128xf32> to vector<16x128xf32>
    %29 = arith.addf %26, %28 : vector<16x128xf32>
    %30 = arith.addf %15, %29 : vector<16x128xf32>
    %c0_20 = arith.constant 0 : index
    %c0_21 = arith.constant 0 : index
    %31 = vector.load %arg9[%c0_20, %c0_21] : memref<16x128xf32, #tpu.memory_space<vmem>>, vector<16x128xf32>
    tpu.vector_store %arg9[%c0_20, %c0_21], %30 {strides = array<i32>} : memref<16x128xf32, #tpu.memory_space<vmem>>, vector<16x128xf32>,
    return
  }
  func.func @transform_0(%arg0: i32) -> (i32, i32) {
    %c0_i32 = arith.constant 0 : i32
    %c0_i32_0 = arith.constant 0 : i32
    return %arg0, %c0_i32 : i32, i32
  }
  func.func @transform_1(%arg0: i32) -> (i32, i32) {
    %c0_i32 = arith.constant 0 : i32
    %c0_i32_0 = arith.constant 0 : i32
    %c0_i32_1 = arith.constant 0 : i32
    return %c0_i32, %c0_i32_0 : i32, i32
  }
  func.func @transform_2(%arg0: i32) -> (i32, i32) {
    %c0_i32 = arith.constant 0 : i32
    %c0_i32_0 = arith.constant 0 : i32
    %c0_i32_1 = arith.constant 0 : i32
    return %c0_i32, %c0_i32_0 : i32, i32
  }
  func.func @transform_3(%arg0: i32) -> (i32, i32) {
    %c0_i32 = arith.constant 0 : i32
    %c0_i32_0 = arith.constant 0 : i32
    %c0_i32_1 = arith.constant 0 : i32
    return %c0_i32, %c0_i32_0 : i32, i32
  }
  func.func @transform_4(%arg0: i32) -> (i32, i32) {
    %c0_i32 = arith.constant 0 : i32
    %c0_i32_0 = arith.constant 0 : i32
    %c0_i32_1 = arith.constant 0 : i32
    return %c0_i32, %c0_i32_0 : i32, i32
  }
  func.func @transform_5(%arg0: i32) -> (i32, i32) {
    %c0_i32 = arith.constant 0 : i32
    %c0_i32_0 = arith.constant 0 : i32
    %c0_i32_1 = arith.constant 0 : i32
    return %c0_i32, %c0_i32_0 : i32, i32
  }
  func.func @transform_6(%arg0: i32) -> (i32, i32) {
    %c0_i32 = arith.constant 0 : i32
    %c0_i32_0 = arith.constant 0 : i32
    %c0_i32_1 = arith.constant 0 : i32
    return %c0_i32, %c0_i32_0 : i32, i32
  }
  func.func @transform_7(%arg0: i32) -> (i32, i32) {
    %c0_i32 = arith.constant 0 : i32
    %c0_i32_0 = arith.constant 0 : i32
    %c0_i32_1 = arith.constant 0 : i32
    return %c0_i32, %c0_i32_0 : i32, i32
  }
  func.func @transform_8(%arg0: i32) -> (i32, i32) {
    %c0_i32 = arith.constant 0 : i32
    %c0_i32_0 = arith.constant 0 : i32
    return %arg0, %c0_i32 : i32, i32
  }
}

</mosaic_0001>

<bundles_post_ra>
// kernel: forward.1
= control target key start
LH: loop header
LB: loop body
LE: loop exit
PB: predicated region body
PF: predicated region fallthrough
CT: control target
= control target key end

     0   :  { %s1243_s27 = smov 0   ;;  %s1427_s0 = inlined_call_operand.vmem [shape: f32[32,128], index: 0, kind: input, shape index: {}]   ;;  %s1428_s1 = inlined_call_operand.vmem [shape: f32[128,128], index: 1, kind: input, shape index: {}]   ;;  %s1429_s2 = inlined_call_operand.vmem [shape: f32[1,128], index: 2, kind: input, shape index: {}]   ;;  %s1430_s3 = inlined_call_operand.vmem [shape: f32[1,128], index: 3, kind: input, shape index: {}]   ;;  %s1431_s4 = inlined_call_operand.vmem [shape: bf16[128,256], index: 4, kind: input, shape index: {}]   ;;  %s1432_s5 = inlined_call_operand.vmem [shape: f32[1,256], index: 5, kind: input, shape index: {}]   ;;  %s1433_s6 = inlined_call_operand.vmem [shape: bf16[256,128], index: 6, kind: input, shape index: {}]   ;;  %s1434_s7 = inlined_call_operand.vmem [shape: f32[1,128], index: 7, kind: input, shape index: {}]   ;;  %s1435_s8 = inlined_call_operand.vmem [shape: f32[32,128], index: 8, kind: output, shape index: {}]  }
   0x1 LB: > { %s898_s28 = sadd.s32 4294967295, %s1195_s27   ;;  %p902_p0 = scmp.ge.s32.totalorder %s1195_s27, 1  ;;  %s1195_s27 = sphi %s1243_s27, %s18_s27  }
   0x2   : > { %p263_p1 = scmp.lt.s32.totalorder %s1195_s27, 3 }
   0x4   : > { %p264_p2 = pnand %p902_p0, %p263_p1 }
   0x5   : > { %v312_v0 = vld [vmem:[%s1428_s1] sm:$0xff] (!%p264_p2)  ;;  %v313_v1 = vld [vmem:[%s1428_s1 + $0x8] sm:$0xff] (!%p264_p2)  ;;  %v314_v2 = vld [vmem:[%s1428_s1 + $0x10] sm:$0xff] (!%p264_p2)  ;;  %s903_s13 = sshll.u32 (!%p264_p2), %s898_s28, 1  ;;  %v1197_v48 = vmov (!%p264_p2), 0  }
   0x6   : > { %267 = sbr.rel (%p264_p2) target bundleno = 936 (0x3a8), region = 52  ;;  %v1072_v3 = vpack.c.bf16 (!%p264_p2), %v313_v1, %v312_v0  ;;  %v315_v4 = vld [vmem:[%s1428_s1 + $0x18] sm:$0xff] (!%p264_p2)  ;;  %p298_p3 = scmp.lt.s32.totalorder (!%p264_p2), %s903_s13, 3  ;;  %v316_v6 = vld [vmem:[%s1428_s1 + $0x20] sm:$0xff] (!%p264_p2)  ;;  %v317_v7 = vld [vmem:[%s1428_s1 + $0x28] sm:$0xff] (!%p264_p2) }
   0x7   : > { %v1076_v5 = vpack.c.bf16 (!%p264_p2), %v315_v4, %v314_v2  ;;  %v318_v8 = vld [vmem:[%s1428_s1 + $0x30] sm:$0xff] (!%p264_p2)  ;;  %v1080_v9 = vpack.c.bf16 (!%p264_p2), %v317_v7, %v316_v6  ;;  %v319_v10 = vld [vmem:[%s1428_s1 + $0x38] sm:$0xff] (!%p264_p2)  ;;  %v320_v12 = vld [vmem:[%s1428_s1 + $0x40] sm:$0xff] (!%p264_p2) }
   0x8   : > { %1073 = vmatprep.subr.bf16.mxu0 (!%p264_p2), %v1072_v3  ;;  %1105 = vmatprep.subr.bf16.mxu1 (!%p264_p2), %v1072_v3  ;;  %v321_v13 = vld [vmem:[%s1428_s1 + $0x48] sm:$0xff] (!%p264_p2)  ;;  %v1084_v14 = vpack.c.bf16 (!%p264_p2), %v319_v10, %v318_v8  ;;  %v322_v15 = vld [vmem:[%s1428_s1 + $0x50] sm:$0xff] (!%p264_p2)  ;;  %v323_v16 = vld [vmem:[%s1428_s1 + $0x58] sm:$0xff] (!%p264_p2) }
   0x9   : > { %1075 = vmatpush3.bf16.msra.mxu0 (!%p264_p2), %v1072_v3  ;;  %1107 = vmatpush3.bf16.msra.mxu1 (!%p264_p2), %v1072_v3  ;;  %v1088_v17 = vpack.c.bf16 (!%p264_p2), %v321_v13, %v320_v12  ;;  %v324_v18 = vld [vmem:[%s1428_s1 + $0x60] sm:$0xff] (!%p264_p2)  ;;  %v325_v19 = vld [vmem:[%s1428_s1 + $0x68] sm:$0xff] (!%p264_p2)  ;;  %v1092_v20 = vpack.c.bf16 (!%p264_p2), %v323_v16, %v322_v15  ;;  %v326_v22 = vld [vmem:[%s1428_s1 + $0x70] sm:$0xff] (!%p264_p2)  ;;  %v523_v16 = vlaneseq (!%p264_p2) }
   0xa   : > { %1077 = vmatprep.subr.bf16.mxu0 (!%p264_p2), %v1076_v5  ;;  %1109 = vmatprep.subr.bf16.mxu1 (!%p264_p2), %v1076_v5  ;;  %v1096_v21 = vpack.c.bf16 (!%p264_p2), %v325_v19, %v324_v18  ;;  %v327_v23 = vld [vmem:[%s1428_s1 + $0x78] sm:$0xff] (!%p264_p2)  ;;  %v1145_v26 = vld [vmem:[%s1431_s4] ss:$8 sps:$4 sm:$0xff] (!%p264_p2)   ;;  %v1147_v27 = vld [vmem:[%s1431_s4 + $0x4] ss:$8 sps:$4 sm:$0xff] (!%p264_p2)  }
   0xb   : > { %v1100_v24 = vpack.c.bf16 (!%p264_p2), %v327_v23, %v326_v22  ;;  %v1150_v28 = vld [vmem:[%s1431_s4 + $0x14] ss:$8 sps:$4 sm:$0xff] (!%p264_p2)   ;;  %v1148_v29 = vld [vmem:[%s1431_s4 + $0x10] ss:$8 sps:$4 sm:$0xff] (!%p264_p2)   ;;  %v1153_v30 = vld [vmem:[%s1431_s4 + $0x24] ss:$8 sps:$4 sm:$0xff] (!%p264_p2)  }
   0xc   : > { %v1151_v31 = vld [vmem:[%s1431_s4 + $0x20] ss:$8 sps:$4 sm:$0xff] (!%p264_p2)   ;;  %v1156_v38 = vld [vmem:[%s1431_s4 + $0x34] ss:$8 sps:$4 sm:$0xff] (!%p264_p2)   ;;  %v1154_v39 = vld [vmem:[%s1431_s4 + $0x30] ss:$8 sps:$4 sm:$0xff] (!%p264_p2)  }
   0xd   : > { %s1437_s13 = smov (!%p298_p3, %s903_s13), 3  ;;  %1079 = vmatpush3.bf16.msra.mxu0 %v1076_v5  ;;  %1111 = vmatpush3.bf16.msra.mxu1 %v1076_v5  ;;  %v1159_v40 = vld [vmem:[%s1431_s4 + $0x44] ss:$8 sps:$4 sm:$0xff]   ;;  %v1157_v41 = vld [vmem:[%s1431_s4 + $0x40] ss:$8 sps:$4 sm:$0xff]   ;;  %v1173_v53 = vld [vmem:[%s1433_s6 + $0x50] sm:$0xff]  }
   0xe   : > { %s904_s24 = sshll.u32 %s1437_s13, 3  ;;  %1081 = vmatprep.subr.bf16.mxu0 %v1080_v9  ;;  %1113 = vmatprep.subr.bf16.mxu1 %v1080_v9  ;;  %v1162_v42 = vld [vmem:[%s1431_s4 + $0x54] ss:$8 sps:$4 sm:$0xff]   ;;  %v1160_v43 = vld [vmem:[%s1431_s4 + $0x50] ss:$8 sps:$4 sm:$0xff]   ;;  %v1169_v49 = vld [vmem:[%s1433_s6 + $0x40] sm:$0xff]  }
   0xf   : > { %s1283_s28 = scalar_lea.vmem %s1427_s0, %s904_s24  ;;  %v1165_v44 = vld [vmem:[%s1431_s4 + $0x64] ss:$8 sps:$4 sm:$0xff]   ;;  %v1163_v45 = vld [vmem:[%s1431_s4 + $0x60] ss:$8 sps:$4 sm:$0xff]   ;;  %v1168_v46 = vld [vmem:[%s1431_s4 + $0x74] ss:$8 sps:$4 sm:$0xff]   ;;  %s307_s22 = scalar_lea.vmem %s1435_s8, %s904_s24 }
  0x10   : > { %v310_v11 = vld [vmem:[%s1283_s28] sm:$0xff]  ;;  %v311_v25 = vld [vmem:[%s1283_s28 + $0x8] sm:$0xff]  ;;  %v1166_v47 = vld [vmem:[%s1431_s4 + $0x70] ss:$8 sps:$4 sm:$0xff]  }
  0x11   : > { %1034 = vmatprep.mubr.f32.mxu0 %v310_v11  ;;  %1083 = vmatpush3.bf16.msra.mxu0 %v1080_v9  ;;  %v1170_v50 = vld [vmem:[%s1433_s6] sm:$0xff]   ;;  %v1171_v51 = vld [vmem:[%s1433_s6 + $0x48] sm:$0xff]   ;;  %v1174_v54 = vld [vmem:[%s1433_s6 + $0x10] sm:$0xff]  }
  0x12   : > { %1085 = vmatprep.subr.bf16.mxu0 %v1084_v14  ;;  %1115 = vmatpush3.bf16.msra.mxu1 %v1080_v9  ;;  %v1172_v52 = vld [vmem:[%s1433_s6 + $0x8] sm:$0xff]   ;;  %v1175_v55 = vld [vmem:[%s1433_s6 + $0x58] sm:$0xff]   ;;  %v1177_v57 = vld [vmem:[%s1433_s6 + $0x60] sm:$0xff]  }
  0x13   : > { %1117 = vmatprep.subr.bf16.mxu1 %v1084_v14  ;;  %v1176_v56 = vld [vmem:[%s1433_s6 + $0x18] sm:$0xff]   ;;  %v1178_v58 = vld [vmem:[%s1433_s6 + $0x20] sm:$0xff]   ;;  %v1179_v59 = vld [vmem:[%s1433_s6 + $0x68] sm:$0xff]  }
  0x14   : > { %v907_v1 = vld [vmem:[%s1429_s2] ss:$0 sm:$0xff]  ;;  %v1181_v12 = vld [vmem:[%s1433_s6 + $0x70] sm:$0xff]   ;;  %v1184_v15 = vld [vmem:[%s1433_s6 + $0x38] sm:$0xff]  }
  0x15   : > { %1087 = vmatpush3.bf16.msra.mxu0 %v1084_v14  ;;  %v908_v5 = vld [vmem:[%s1430_s3] ss:$0 sm:$0xff]  ;;  %v1182_v13 = vld [vmem:[%s1433_s6 + $0x30] sm:$0xff]  }
  0x16   : > { %1089 = vmatprep.subr.bf16.mxu0 %v1088_v17  ;;  %1119 = vmatpush3.bf16.msra.mxu1 %v1084_v14  ;;  %v1183_v14 = vld [vmem:[%s1433_s6 + $0x78] sm:$0xff]   ;;  %v521_v19 = vld [vmem:[%s1432_s5] sm:$0x3] }
  0x17   : > { %1121 = vmatprep.subr.bf16.mxu1 %v1088_v17 }
  0x19   : > { %1091 = vmatpush3.bf16.msra.mxu0 %v1088_v17 }
  0x1a   : > { %1093 = vmatprep.subr.bf16.mxu0 %v1092_v20  ;;  %1123 = vmatpush3.bf16.msra.mxu1 %v1088_v17  ;;  %v524_v17 = vshrl.u32 %v523_v16, 7 }
  0x1b   : > { %1125 = vmatprep.subr.bf16.mxu1 %v1092_v20 }
  0x1c   : > { %v525_v18 = vsub.s32 0, %v524_v17 }
  0x1d   : > { %1095 = vmatpush3.bf16.msra.mxu0 %v1092_v20 }
  0x1e   : > { %1097 = vmatprep.subr.bf16.mxu0 %v1096_v21  ;;  %1127 = vmatpush3.bf16.msra.mxu1 %v1092_v20  ;;  %v529_v20 = vsub.s32 1, %v524_v17 }
  0x1f   : > { %1129 = vmatprep.subr.bf16.mxu1 %v1096_v21 }
  0x20   : > { %v530_v22 = vrot.slane %v521_v19, %v529_v20 }
  0x21   : > { %1099 = vmatpush3.bf16.msra.mxu0 %v1096_v21 }
  0x22   : > { %1101 = vmatprep.subr.bf16.mxu0 %v1100_v24  ;;  %1131 = vmatpush3.bf16.msra.mxu1 %v1096_v21  ;;  %v526_v21 = vrot.slane %v521_v19, %v525_v18 }
  0x23   : > { %1133 = vmatprep.subr.bf16.mxu1 %v1100_v24 }
  0x25   : > { %1103 = vmatpush3.bf16.msra.mxu0 %v1100_v24 }
  0x26   : > { %1135 = vmatpush3.bf16.msra.mxu1 %v1100_v24  ;;  %613 = vmatprep.subr.bf16.mxu0 %v1147_v27 }
  0x27   : > { %980 = vmatprep.subr.bf16.mxu1 %v1169_v49 }
  0x28   : > { %1035 = vmatmul.mubr.f32.vlgmr.msra.gmra.mrb[0].mxu0 %v311_v25 }
  0x29   : > { %614 = vmatpush1.bf16.msra.mxu0 %v1145_v26  ;;  %645 = vmatprep.mubr.bf16.mxu0 %v1197_v48 }
  0x2a   : > { %615 = vmatprep.subr.bf16.mxu0 %v1150_v28 }
  0x2d   : > { %616 = vmatpush1.bf16.msra.mxu0 %v1148_v29 }
  0x2e   : > { %617 = vmatprep.subr.bf16.mxu0 %v1153_v30 }
  0x31   : > { %618 = vmatpush1.bf16.msra.mxu0 %v1151_v31 }
  0x32   : > { %619 = vmatprep.subr.bf16.mxu0 %v1156_v38  ;;  %v925_v38 = vld [vmem:[%s1434_s7] ss:$0 sm:$0xff] }
  0x35   : > { %620 = vmatpush1.bf16.msra.mxu0 %v1154_v39 }
  0x36   : > { %621 = vmatprep.subr.bf16.mxu0 %v1159_v40 }
  0x39   : > { %622 = vmatpush1.bf16.msra.mxu0 %v1157_v41 }
  0x3a   : > { %623 = vmatprep.subr.bf16.mxu0 %v1162_v42 }
  0x3d   : > { %624 = vmatpush1.bf16.msra.mxu0 %v1160_v43 }
  0x3e   : > { %625 = vmatprep.subr.bf16.mxu0 %v1165_v44 }
  0x41   : > { %626 = vmatpush1.bf16.msra.mxu0 %v1163_v45 }
  0x42   : > { %627 = vmatprep.subr.bf16.mxu0 %v1168_v46 }
  0x45   : > { %628 = vmatpush1.bf16.msra.mxu0 %v1166_v47 }
  0xfb   : > { %v1036_v32 = vpop.f32.mrb[0].mxu0 }
  0xfc   : > { %v404_v33 = vsub.f32 %v311_v25, %v1036_v32  ;;  %v394_v34 = vpop.f32.mrb[1].mxu0 }
  0xfd   : > { %v403_v35 = vsub.f32 %v310_v11, %v394_v34  ;;  %v1180_v11 = vld [vmem:[%s1433_s6 + $0x28] sm:$0xff]  }
  0xfe   : > { %v406_v37 = vmul.f32 %v404_v33, %v404_v33 }
  0xff   : > { %v405_v36 = vmul.f32 %v403_v35, %v403_v35 }
 0x101   : > { %1069 = vmatprep.mubr.f32.mxu1 %v405_v36 }
 0x102   : > { %1070 = vmatmul.mubr.f32.vlgmr.msra.gmra.mrb[0].mxu1 %v406_v37 }
 0x103   : > { %981 = vmatpush3.bf16.msra.mxu1 %v1170_v50 }
 0x104   : > { %982 = vmatprep.subr.bf16.mxu1 %v1171_v51 }
 0x107   : > { %983 = vmatpush3.bf16.msra.mxu1 %v1172_v52 }
 0x108   : > { %984 = vmatprep.subr.bf16.mxu1 %v1173_v53 }
 0x10b   : > { %985 = vmatpush3.bf16.msra.mxu1 %v1174_v54 }
 0x10c   : > { %986 = vmatprep.subr.bf16.mxu1 %v1175_v55 }
 0x10f   : > { %987 = vmatpush3.bf16.msra.mxu1 %v1176_v56 }
 0x110   : > { %988 = vmatprep.subr.bf16.mxu1 %v1177_v57 }
 0x113   : > { %989 = vmatpush3.bf16.msra.mxu1 %v1178_v58 }
 0x114   : > { %990 = vmatprep.subr.bf16.mxu1 %v1179_v59 }
 0x117   : > { %991 = vmatpush3.bf16.msra.mxu1 %v1180_v11 }
 0x118   : > { %992 = vmatprep.subr.bf16.mxu1 %v1181_v12 }
 0x11b   : > { %993 = vmatpush3.bf16.msra.mxu1 %v1182_v13 }
 0x11c   : > { %994 = vmatprep.subr.bf16.mxu1 %v1183_v14 }
 0x11f   : > { %995 = vmatpush3.bf16.msra.mxu1 %v1184_v15 }
 0x1d5   : > { %v1071_v60 = vpop.f32.mrb[0].mxu1 }
 0x1d6   : > { %v479_v61 = vadd.f32 1e-05, %v1071_v60  ;;  %v473_v62 = vpop.f32.mrb[1].mxu1 }
 0x1d7   : > { %v474_v63 = vadd.f32 1e-05, %v473_v62 }
 0x1d8   : > { %1185 = vrsqrt.f32 %v479_v61 }
 0x1d9   : > { %1187 = vrsqrt.f32 %v474_v63 }
 0x1e2   : > { %v1186_v0 = vpop.eup %1185 }
 0x1e3   : > { %v1188_v2 = vpop.eup %1187  ;;  %v485_v3 = vmul.f32 %v1186_v0, %v404_v33 }
 0x1e4   : > { %v484_v4 = vmul.f32 %v1188_v2, %v403_v35 }
 0x1e5   : > { %v494_v6 = vmul.f32 %v907_v1, %v485_v3 }
 0x1e6   : > { %v493_v7 = vmul.f32 %v907_v1, %v484_v4 }
 0x1e7   : > { %v503_v8 = vadd.f32 %v908_v5, %v494_v6 }
 0x1e8   : > { %v502_v9 = vadd.f32 %v908_v5, %v493_v7 }
 0x1ea   : > { %v504_v10 = vpack.c.bf16 %v503_v8, %v502_v9 }
 0x1ec   : > { %646 = vmatmul.mubr.bf16.vlgmr.msra.gmra.mrb[4].mxu0 %v504_v10 }
 0x2bf   : > { %v647_v23 = vpop.f32.mrb[4].mxu0 }
 0x2c0   : > { %v648_v24 = vadd.f32 %v647_v23, %v526_v21  ;;  %v649_v25 = vpop.f32.mrb[5].mxu0 }
 0x2c1   : > { %v650_v26 = vadd.f32 %v649_v25, %v530_v22  ;;  %v651_v27 = vpop.f32.mrb[6].mxu0 }
 0x2c2   : > { %v652_v28 = vadd.f32 %v651_v27, %v526_v21  ;;  %v653_v29 = vpop.f32.mrb[7].mxu0  ;;  %v656_v31 = vmax.f32 %v648_v24, 0.0 }
 0x2c3   : > { %v654_v30 = vadd.f32 %v653_v29, %v530_v22  ;;  %v657_v33 = vmax.f32 %v650_v26, 0.0 }
 0x2c4   : > { %v658_v32 = vmax.f32 %v652_v28, 0.0 }
 0x2c5   : > { %v659_v34 = vmax.f32 %v654_v30, 0.0 }
 0x2c6   : > { %v660_v35 = vpack.c.bf16 %v658_v32, %v656_v31 }
 0x2c7   : > { %v661_v36 = vpack.c.bf16 %v659_v34, %v657_v33 }
 0x2c9   : > { %829 = vmatprep.mubr.bf16.mxu1 %v661_v36 }
 0x2ca   : > { %830 = vmatmul.mubr.bf16.vlgmr.msra.gmra.mrb[4].mxu1 %v660_v35 }
 0x39d   : > { %v996_v37 = vpop.f32.mrb[4].mxu1 }
 0x39e   : > { %v997_v39 = vpop.f32.mrb[5].mxu1 }
 0x39f   : > { %v998_v40 = vadd.f32 %v997_v39, %v996_v37  ;;  %v999_v41 = vpop.f32.mrb[6].mxu1 }
 0x3a0   : > { %v1000_v42 = vpop.f32.mrb[7].mxu1 }
 0x3a1   : > { %v832_v43 = vadd.f32 %v998_v40, %v925_v38  ;;  %v1001_v44 = vadd.f32 %v1000_v42, %v999_v41 }
 0x3a3   : > { %v838_v45 = vadd.f32 %v832_v43, %v502_v9  ;;  %v835_v46 = vadd.f32 %v1001_v44, %v925_v38 }
 0x3a5   : > { %840 = vst [vmem:[%s307_s22] sm:$0xff] %v838_v45  ;;  %v839_v47 = vadd.f32 %v835_v46, %v503_v8 }
 0x3a7   : > { %841 = vst [vmem:[%s307_s22 + $0x8] sm:$0xff] %v839_v47 }
 0x3a8 PF: > { %s18_s27 = sadd.s32 1, %s1195_s27  }
 0x3a9   : > { %p15_p4 = scmp.ge.s32.totalorder %s18_s27, 4  }
 0x3ab   :  { %17 = sbr.rel (!%p15_p4) target bundleno = 1 (0x1), region = 82 }

</bundles_post_ra>
